<compile_context>
chip_gen: v7x
topology: tpu7x:2x2x1
jax: 0.10.0
libtpu: 0.0.40
codegen_flags: <defaults>
</compile_context>

<pallas_src>
import jax
import jax.numpy as jnp
from jax.experimental import pallas as pl
from jax.experimental.pallas import tpu as pltpu


# ---------------------------------------------------------------------------
# Kernels
# ---------------------------------------------------------------------------

def _pool_project_kernel(x_ref, w_ref, p_ref, o_ref):
    """AvgPool(scale) + 1x1 conv for one (batch, row-group) block.

    x_ref : (1, C_in, L)    flat NCHW pixels, L = row_tile*scale*W (lane-dense)
    w_ref : (C_out, C_in)   conv weight / (scale*scale), float32
    p_ref : (L, Po)         0/1 pooling-window selection matrix, Po = row_tile*Wo
    o_ref : (1, C_out, Po)  lane-dense output pixels
    """
    # Vertical + horizontal window sums in one MXU matmul (f32 accumulation).
    pooled = jnp.dot(x_ref[0], p_ref[...], preferred_element_type=jnp.float32)
    # Channel mix (1x1 conv); the 1/K pooling normalization is folded into w.
    out = jnp.dot(w_ref[...], pooled, preferred_element_type=jnp.float32)
    # Single full-width store for the whole block (no per-row masked stores).
    o_ref[0, :, :] = out.astype(o_ref.dtype)


def _project_kernel(x_ref, w_ref, o_ref):
    """scale == 1 path: identity pooling, just the 1x1 conv."""
    out = jnp.dot(w_ref[...], x_ref[0].astype(jnp.float32),
                  preferred_element_type=jnp.float32)
    o_ref[0, :, :] = out.astype(o_ref.dtype)


# ---------------------------------------------------------------------------
# Tiling / VMEM budgeting
# ---------------------------------------------------------------------------

def _vmem_capacity_bytes():
    try:
        info = pltpu.get_tpu_info()
        cap = getattr(info, "vmem_capacity_bytes", None)
        if cap:
            return int(cap)
    except Exception:
        pass
    return 64 << 20  # conservative fallback: smallest known per-core VMEM (v7x)


def _pick_row_tile(*, Ho, Wo, C, s, W, itemsize, small_vmem, n_batch):
    """Output rows per block: (8,128)-legal, VMEM-budgeted, >=2 grid steps."""
    max_in_block = (8 << 20) if small_vmem else (20 << 20)
    max_p_block = (4 << 20) if small_vmem else (8 << 20)

    def legal(th):
        if Ho % th:
            return False
        if th == Ho:                         # full extent is always allowed
            return True
        return (th * s * W) % 128 == 0 and (th * Wo) % 128 == 0

    def in_bytes(th):
        return C * th * s * W * itemsize

    def p_bytes(th):
        return (th * s * W) * (th * Wo) * itemsize if s > 1 else 0

    candidates = [th for th in range(1, Ho + 1) if legal(th)]
    fitting = [th for th in candidates
               if in_bytes(th) <= max_in_block and p_bytes(th) <= max_p_block]
    if not fitting:
        # Smallest legal tile; only reachable for extreme (C, W) combinations.
        return candidates[0]
    pick = fitting[-1]                       # memory-bound: biggest fitting tile
    if n_batch * (Ho // pick) < 2:           # keep both v7x TensorCores busy
        multi = [th for th in fitting if n_batch * (Ho // th) >= 2]
        if multi:
            pick = multi[-1]
    return pick


def _padded_tile_bytes(rows, cols, itemsize):
    """Crude VMEM footprint estimate including sublane/lane padding."""
    sub = 8 * max(1, 4 // itemsize)          # 8 (f32), 16 (bf16), 32 (int8)
    prows = -(-rows // sub) * sub
    pcols = -(-cols // 128) * 128
    return prows * pcols * itemsize


# ---------------------------------------------------------------------------
# pallas_call wrapper
# ---------------------------------------------------------------------------

def _run_control_project(x4, weight, *, scale, Ho, Wo):
    N, C, H, W = x4.shape
    s = scale
    dtype = x4.dtype
    itemsize = dtype.itemsize

    cap_bytes = _vmem_capacity_bytes()
    small_vmem = cap_bytes <= (64 << 20)     # v7x: 64 MiB / TC; v5e/v6e: 128 MiB

    row_tile = _pick_row_tile(Ho=Ho, Wo=Wo, C=C, s=s, W=W, itemsize=itemsize,
                              small_vmem=small_vmem, n_batch=N)
    L = row_tile * s * W                     # flat input pixels per block
    Po = row_tile * Wo                       # flat output pixels per block

    # Free reshape for contiguous NCHW: no host transpose / extra HBM round trip.
    x_flat = x4.reshape(N, C, H * W)

    # Fold the 1/K pooling normalization into the (tiny) conv weight; keep f32.
    w_scaled = weight.astype(jnp.float32) / float(s * s)

    operands = [x_flat, w_scaled]
    in_specs = [
        pl.BlockSpec((1, C, L), lambda n, r: (n, 0, r)),
        pl.BlockSpec((C, C), lambda n, r: (0, 0)),
    ]
    kernel = _project_kernel
    p_vmem = 0
    if s > 1:
        # 0/1 window-selection matrix for the whole row group: P[l, p] = 1 iff
        # flat input pixel l lies in the pooling window of flat output pixel p.
        li = jnp.arange(L)
        t_l, w_l = li // (s * W), li % W
        pi = jnp.arange(Po)
        t_p, wo_p = pi // Wo, pi % Wo
        pool_mat = ((t_l[:, None] == t_p[None, :])
                    & ((w_l[:, None] // s) == wo_p[None, :])).astype(dtype)
        operands.append(pool_mat)
        in_specs.append(pl.BlockSpec((L, Po), lambda n, r: (0, 0)))
        kernel = _pool_project_kernel
        p_vmem = _padded_tile_bytes(L, Po, itemsize)

    # VMEM limit: generous headroom, capped below physical capacity (48 MiB on
    # 64-MiB parts, 64 MiB on 128-MiB parts); only exceeded if truly required.
    in_vmem = _padded_tile_bytes(C, L, itemsize)
    out_vmem = _padded_tile_bytes(C, Po, itemsize)
    w_vmem = _padded_tile_bytes(C, C, 4)
    need = 2 * (in_vmem + out_vmem + w_vmem + p_vmem) + (4 << 20)
    limit_cap = (48 << 20) if small_vmem else (64 << 20)
    vmem_limit = int(need if need > limit_cap else limit_cap)

    return pl.pallas_call(
        kernel,
        out_shape=jax.ShapeDtypeStruct((N, C, Ho * Wo), dtype),
        grid_spec=pltpu.PrefetchScalarGridSpec(
            num_scalar_prefetch=0,
            grid=(N, Ho // row_tile),
            in_specs=in_specs,
            out_specs=pl.BlockSpec((1, C, Po), lambda n, r: (n, 0, r)),
        ),
        compiler_params=pltpu.CompilerParams(
            dimension_semantics=("parallel", "parallel"),
            vmem_limit_bytes=vmem_limit,
        ),
    )(*operands)


def control_project(hidden_states, weight, *, scale=8, is_empty=False):
    """JAX/Pallas equivalent of ControlProject.forward.

    hidden_states: (B, C, H, W) or (B, F, C, H, W) (PyTorch NCHW layout).
    weight: (C, C) or (C, C, 1, 1) 1x1-conv weight (c_out, c_in), no bias.
    """
    assert scale and (scale & (scale - 1)) == 0

    if is_empty:
        shape = list(hidden_states.shape)
        shape[-2] = shape[-2] // scale
        shape[-1] = shape[-1] // scale
        return jnp.zeros(shape, hidden_states.dtype)

    if weight.ndim == 4:                     # accept raw Conv2d weight layout
        weight = weight[:, :, 0, 0]

    five_d = hidden_states.ndim == 5
    if five_d:
        B, F, C, H, W = hidden_states.shape
        x = hidden_states.reshape(B * F, C, H, W)
    else:
        x = hidden_states

    N, C, H, W = x.shape
    s = scale
    Ho, Wo = H // s, W // s
    if Ho == 0 or Wo == 0:
        out = jnp.zeros((N, C, Ho, Wo), x.dtype)
    else:
        if H != Ho * s or W != Wo * s:       # match PyTorch AvgPool2d floor mode
            x = x[:, :, :Ho * s, :Wo * s]
        out = _run_control_project(x, weight, scale=s, Ho=Ho, Wo=Wo)  # (N,C,Ho*Wo)
        out = out.reshape(N, C, Ho, Wo)      # free reshape (no transpose)
    if five_d:
        out = out.reshape(B, F, C, Ho, Wo)
    return out


# ---------------------------------------------------------------------------
# Reference + self-test
# ---------------------------------------------------------------------------

def _reference(hidden_states, weight, *, scale):
    # Pure-JAX reference: AvgPool2d(scale, scale) then 1x1 conv (no bias).
    # Implemented with elementwise ops + sums only (no TPU matmul), so it is
    # full-f32-exact regardless of XLA matmul precision defaults.
    x = hidden_states.astype(jnp.float32)
    N, C, H, W = x.shape
    Ho, Wo = H // scale, W // scale
    x = x[:, :, :Ho * scale, :Wo * scale]
    pooled = x.reshape(N, C, Ho, scale, Wo, scale).mean(axis=(3, 5))  # (N,C,Ho,Wo)
    out = (weight.astype(jnp.float32)[None, :, :, None, None]
           * pooled[:, None, :, :, :]).sum(axis=2)                    # (N,C,Ho,Wo)
    return out.astype(hidden_states.dtype)


if __name__ == "__main__":
    key = jax.random.PRNGKey(0)
    k_x, k_w = jax.random.split(key)

    num_channels = 4
    scale = 8
    x = jax.random.normal(k_x, (2, num_channels, 16, 16), dtype=jnp.float32)
    # Conv2d(C, C, 1, bias=False) weight (C, C, 1, 1) -> (C, C).
    weight = jax.random.normal(k_w, (num_channels, num_channels), dtype=jnp.float32) * 0.1

    out = control_project(x, weight, scale=scale, is_empty=False)
    out = jax.block_until_ready(out)

    ref = _reference(x, weight, scale=scale)
    assert out.shape == (2, num_channels, 16 // scale, 16 // scale), out.shape
    # Tolerance covers MXU f32 multi-pass matmul behavior across generations.
    assert jnp.allclose(out, ref, atol=1e-3, rtol=1e-3), "mismatch vs reference"

    # 5-D (B, F, C, H, W) path — same kernel, reshape glue only.
    x5 = x.reshape(1, 2, num_channels, 16, 16)
    out5 = jax.block_until_ready(control_project(x5, weight, scale=scale))
    assert out5.shape == (1, 2, num_channels, 2, 2), out5.shape
    assert jnp.allclose(out5.reshape(2, num_channels, 2, 2), ref, atol=1e-3, rtol=1e-3)

    # is_empty branch (pure glue, no kernel needed).
    empty = control_project(x, weight, scale=scale, is_empty=True)
    assert empty.shape == (2, num_channels, 2, 2)
    assert jnp.all(empty == 0)

    print("KERNEL_OK")
</pallas_src>

<mosaic_0001>
module attributes {stable_mosaic.version = 11 : i64} {
  func.func @_pool_project_kernel(%arg0: i32, %arg1: i32, %arg2: memref<1x4x256xf32, #tpu.memory_space<vmem>>, %arg3: memref<4x4xf32, #tpu.memory_space<vmem>>, %arg4: memref<256x4xf32, #tpu.memory_space<vmem>>, %arg5: memref<1x4x4xf32, #tpu.memory_space<vmem>>) attributes {dimension_semantics = [#tpu.dimension_semantics<parallel>, #tpu.dimension_semantics<parallel>], iteration_bounds = array<i64: 2, 1>, scalar_prefetch = 0 : i64, scratch_operands = 0 : i64, tpu.core_type = #tpu.core_type<tc>, window_params = [{transform_indices = @transform_0, window_bounds = array<i64: 1, 4, 256>}, {pipeline_mode = #tpu.pipeline_mode<synchronous>, transform_indices = @transform_1, window_bounds = array<i64: 4, 4>}, {pipeline_mode = #tpu.pipeline_mode<synchronous>, transform_indices = @transform_2, window_bounds = array<i64: 256, 4>}, {transform_indices = @transform_3, window_bounds = array<i64: 1, 4, 4>}]} {
    %c0 = arith.constant 0 : index
    %c0_0 = arith.constant 0 : index
    %c0_1 = arith.constant 0 : index
    %0 = vector.load %arg2[%c0, %c0_0, %c0_1] : memref<1x4x256xf32, #tpu.memory_space<vmem>>, vector<1x4x256xf32>
    %1 = vector.shape_cast %0 : vector<1x4x256xf32> to vector<4x256xf32>
    %c0_2 = arith.constant 0 : index
    %c0_3 = arith.constant 0 : index
    %2 = vector.load %arg4[%c0_2, %c0_3] : memref<256x4xf32, #tpu.memory_space<vmem>>, vector<256x4xf32>
    %cst = arith.constant dense<0.000000e+00> : vector<4x4xf32>
    %3 = tpu.matmul %1, %2, %cst {dimension_numbers = #tpu.dot_dimension_numbers<[1], [0], [0], [1], [0, 0, 1, 1], [], []>} : vector<4x256xf32>, vector<256x4xf32>, vector<4x4xf32> -> vector<4x4xf32>
    %c0_4 = arith.constant 0 : index
    %c0_5 = arith.constant 0 : index
    %4 = vector.load %arg3[%c0_4, %c0_5] : memref<4x4xf32, #tpu.memory_space<vmem>>, vector<4x4xf32>
    %cst_6 = arith.constant dense<0.000000e+00> : vector<4x4xf32>
    %5 = tpu.matmul %4, %3, %cst_6 {dimension_numbers = #tpu.dot_dimension_numbers<[1], [0], [0], [1], [0, 0, 1, 1], [], []>} : vector<4x4xf32>, vector<4x4xf32>, vector<4x4xf32> -> vector<4x4xf32>
    %c0_7 = arith.constant 0 : index
    %c0_8 = arith.constant 0 : index
    %c0_9 = arith.constant 0 : index
    %6 = vector.load %arg5[%c0_7, %c0_8, %c0_9] : memref<1x4x4xf32, #tpu.memory_space<vmem>>, vector<1x4x4xf32>
    %7 = vector.shape_cast %6 : vector<1x4x4xf32> to vector<4x4xf32>
    %8 = vector.shape_cast %5 : vector<4x4xf32> to vector<1x4x4xf32>
    tpu.vector_store %arg5[%c0_7, %c0_8, %c0_9], %8 {strides = array<i32>} : memref<1x4x4xf32, #tpu.memory_space<vmem>>, vector<1x4x4xf32>,
    return
  }
  func.func @transform_0(%arg0: i32, %arg1: i32) -> (i32, i32, i32) {
    %c0_i32 = arith.constant 0 : i32
    %c0_i32_0 = arith.constant 0 : i32
    return %arg0, %c0_i32, %arg1 : i32, i32, i32
  }
  func.func @transform_1(%arg0: i32, %arg1: i32) -> (i32, i32) {
    %c0_i32 = arith.constant 0 : i32
    %c0_i32_0 = arith.constant 0 : i32
    %c0_i32_1 = arith.constant 0 : i32
    return %c0_i32, %c0_i32_0 : i32, i32
  }
  func.func @transform_2(%arg0: i32, %arg1: i32) -> (i32, i32) {
    %c0_i32 = arith.constant 0 : i32
    %c0_i32_0 = arith.constant 0 : i32
    %c0_i32_1 = arith.constant 0 : i32
    return %c0_i32, %c0_i32_0 : i32, i32
  }
  func.func @transform_3(%arg0: i32, %arg1: i32) -> (i32, i32, i32) {
    %c0_i32 = arith.constant 0 : i32
    %c0_i32_0 = arith.constant 0 : i32
    return %arg0, %c0_i32, %arg1 : i32, i32, i32
  }
}

</mosaic_0001>

<bundles_post_ra>
// kernel: tpu_custom_call.1
= control target key start
LH: loop header
LB: loop body
LE: loop exit
PB: predicated region body
PF: predicated region fallthrough
CT: control target
= control target key end

     0   :  { %8 = vsyncpa [#allocation3], 0  ;;  %s936_s0 = inlined_call_operand.vmem [shape: f32[2,4,256], index: 0, kind: input, shape index: {}]   ;;  %s937_s1 = inlined_call_operand.vmem [shape: f32[4,4], index: 1, kind: input, shape index: {}]   ;;  %s938_s2 = inlined_call_operand.vmem [shape: f32[256,4], index: 2, kind: input, shape index: {}]   ;;  %s939_s3 = inlined_call_operand.hbm [shape: f32[2,4,4], index: 3, kind: output, shape index: {}]  }
   0x1   :  { %10 = vsyncpa [#allocation3 + $0x1], 0  ;;  %s725_s12 = smov 0   ;;  %s727_s13 = smov 0  }
   0x2   :  { %s729_s14 = smov 0   ;;  %s731_s15 = smov 0  }
   0x3   :  { %s733_s16 = smov 0   ;;  %s735_s17 = smov 0  }
   0x4 LB: > { %s475_s18 = sadd.s32 4294967295, %s700_s17   ;;  %s476_s19 = sadd.s32 4294967294, %s700_s17   ;;  %s700_s17 = sphi %s735_s17, %s16_s17   ;;  %s696_s16 = sphi %s733_s16, %s946_s16   ;;  %s692_s15 = sphi %s731_s15, %s945_s15   ;;  %s688_s14 = sphi %s729_s14, %s944_s14   ;;  %s684_s13 = sphi %s727_s13, %s943_s13   ;;  %s680_s12 = sphi %s725_s12, %s942_s12  }
   0x5   : > { %s28_s20 = sadd.s32 1, %s696_s16  ;;  %s107_s21 = sadd.s32 1, %s688_s14 }
   0x6   : > { %p30_p0 = scmp.ge.s32.totalorder %s28_s20, 2  ;;  %p117_p1 = scmp.ne.s32.totalorder %s688_s14, %s684_s13 }
   0x7   : > { %p118_p2 = scmp.eq.s32.totalorder %s475_s18, 1  ;;  %p123_p3 = scmp.ne.s32.totalorder %s684_s13, %s680_s12 }
   0x8   : > { %s948_s20 = smov (%p30_p0, %s28_s20), 0  ;;  %p124_p5 = scmp.eq.s32.totalorder %s476_s19, 1 }
   0x9   : > { %p765_p4 = por %p118_p2, %p117_p1  ;;  %s102_s23 = ssub.s32 %s696_s16, %s948_s20 }
   0xa   : > { %p479_p6 = scmp.ge.s32.totalorder %s700_s17, 1  ;;  %p105_p7 = scmp.eq.s32.totalorder %s102_s23, 0 }
   0xb   : > { %p772_p8 = por %p124_p5, %p123_p3  ;;  %p161_p9 = scmp.lt.s32.totalorder %s700_s17, 3 }
   0xc   : > { %s778_s25 = scalar_select %p105_p7, %s688_s14, %s107_s21  }
   0xd   : > { %p162_p10 = pnand %p479_p6, %p161_p9 }
   0xe   : > { %v216_v0 = vld [vmem:[%s938_s2 + $0x80] sm:$0xff] (!%p162_p10)  ;;  %v217_v1 = vld [vmem:[%s938_s2 + $0x88] sm:$0xff] (!%p162_p10)  ;;  %p190_p11 = scmp.lt.s32.totalorder (!%p162_p10), %s692_s15, 1  ;;  %v218_v5 = vld [vmem:[%s938_s2 + $0x90] sm:$0xff] (!%p162_p10)  ;;  %v702_v50 = vmov (!%p162_p10), 0.0   ;;  %vm703_vm0 = vmmov (!%p162_p10), 0  }
   0xf   : > { %165 = sbr.rel (%p162_p10) target bundleno = 491 (0x1eb), region = 32  ;;  %v200_v2 = vld [vmem:[%s938_s2] sm:$0xff] (!%p162_p10)  ;;  %v532_v3 = vpack.c.bf16 (!%p162_p10), %v217_v1, %v216_v0  ;;  %v201_v4 = vld [vmem:[%s938_s2 + $0x8] sm:$0xff] (!%p162_p10)  ;;  %v219_v6 = vld [vmem:[%s938_s2 + $0x98] sm:$0xff] (!%p162_p10)  ;;  %527 = vmatprep.subr.mxu1 (!%p162_p10), %v702_v50  ;;  %529 = vmatprep.mubr.msk.f32.mxu1 (!%p162_p10), %vm703_vm0, %v702_v50  ;;  %vm310_vm1 = vcmask (!%p162_p10), 1043456   ;;  %vm306_vm2 = vcmask (!%p162_p10), 31744  }
  0x10   : > { %v534_v7 = vpack.c.bf16 (!%p162_p10), %v201_v4, %v200_v2  ;;  %v536_v8 = vpack.c.bf16 (!%p162_p10), %v219_v6, %v218_v5  ;;  %v202_v9 = vld [vmem:[%s938_s2 + $0x10] sm:$0xff] (!%p162_p10)  ;;  %v203_v10 = vld [vmem:[%s938_s2 + $0x18] sm:$0xff] (!%p162_p10)  ;;  %v220_v11 = vld [vmem:[%s938_s2 + $0xa0] sm:$0xff] (!%p162_p10)  ;;  %s186_s29 = sand.u32 (!%p162_p10), 1, %s684_s13   ;;  %s486_s5 = sshll.u32 (!%p162_p10), %s692_s15, 6  ;;  %vm384_vm3 = vcmask (!%p162_p10), 27648  }
  0x11   : > { %533 = vmatprep.subr.bf16.mxu0 (!%p162_p10), %v532_v3  ;;  %v221_v12 = vld [vmem:[%s938_s2 + $0xa8] sm:$0xff] (!%p162_p10)  ;;  %v538_v13 = vpack.c.bf16 (!%p162_p10), %v203_v10, %v202_v9  ;;  %v204_v15 = vld [vmem:[%s938_s2 + $0x20] sm:$0xff] (!%p162_p10)  ;;  %v222_v17 = vld [vmem:[%s938_s2 + $0xb0] sm:$0xff] (!%p162_p10)  ;;  %s480_s4 = sshll.u32 (!%p162_p10), %s186_s29, 2  ;;  %s889_s9 = scalar_lea.hbm (!%p162_p10), %s939_s3, %s486_s5 }
  0x12   : > { %535 = vmatpush3.bf16.msra.mxu0 (!%p162_p10), %v534_v7  ;;  %v540_v14 = vpack.c.bf16 (!%p162_p10), %v221_v12, %v220_v11  ;;  %v205_v16 = vld [vmem:[%s938_s2 + $0x28] sm:$0xff] (!%p162_p10)  ;;  %v223_v18 = vld [vmem:[%s938_s2 + $0xb8] sm:$0xff] (!%p162_p10)  ;;  %v206_v21 = vld [vmem:[%s938_s2 + $0x30] sm:$0xff] (!%p162_p10)  ;;  %s188_s6 = scalar_lea.vmem (!%p162_p10), [#allocation2], %s480_s4  ;;  %s387_s10 = scalar_lea.sflag (!%p162_p10), [#allocation3], %s186_s29 }
  0x13   : > { %537 = vmatprep.subr.bf16.mxu0 (!%p162_p10), %v536_v8  ;;  %v542_v19 = vpack.c.bf16 (!%p162_p10), %v205_v16, %v204_v15  ;;  %v544_v20 = vpack.c.bf16 (!%p162_p10), %v223_v18, %v222_v17  ;;  %v207_v22 = vld [vmem:[%s938_s2 + $0x38] sm:$0xff] (!%p162_p10)  ;;  %v224_v23 = vld [vmem:[%s938_s2 + $0xc0] sm:$0xff] (!%p162_p10)  ;;  %v225_v24 = vld [vmem:[%s938_s2 + $0xc8] sm:$0xff] (!%p162_p10) }
  0x14   : > { %v546_v27 = vpack.c.bf16 (!%p162_p10), %v207_v22, %v206_v21  ;;  %v548_v28 = vpack.c.bf16 (!%p162_p10), %v225_v24, %v224_v23  ;;  %v208_v29 = vld [vmem:[%s938_s2 + $0x40] sm:$0xff] (!%p162_p10)  ;;  %v209_v30 = vld [vmem:[%s938_s2 + $0x48] sm:$0xff] (!%p162_p10)  ;;  %v226_v31 = vld [vmem:[%s938_s2 + $0xd0] sm:$0xff] (!%p162_p10) }
  0x15   : > { %v227_v32 = vld [vmem:[%s938_s2 + $0xd8] sm:$0xff] (!%p162_p10)  ;;  %v550_v33 = vpack.c.bf16 (!%p162_p10), %v209_v30, %v208_v29  ;;  %v210_v35 = vld [vmem:[%s938_s2 + $0x50] sm:$0xff] (!%p162_p10)  ;;  %v228_v37 = vld [vmem:[%s938_s2 + $0xe0] sm:$0xff] (!%p162_p10) }
  0x16   : > { %s191_s27 = scalar_select %p190_p11, %s692_s15, 1  ;;  %539 = vmatpush3.bf16.msra.mxu0 %v538_v13  ;;  %v552_v34 = vpack.c.bf16 %v227_v32, %v226_v31  ;;  %v211_v36 = vld [vmem:[%s938_s2 + $0x58] sm:$0xff]  ;;  %v229_v38 = vld [vmem:[%s938_s2 + $0xe8] sm:$0xff]  ;;  %v212_v41 = vld [vmem:[%s938_s2 + $0x60] sm:$0xff] }
  0x17   : > { %541 = vmatprep.subr.bf16.mxu0 %v540_v14  ;;  %v554_v39 = vpack.c.bf16 %v211_v36, %v210_v35  ;;  %v556_v40 = vpack.c.bf16 %v229_v38, %v228_v37  ;;  %v213_v42 = vld [vmem:[%s938_s2 + $0x68] sm:$0xff]  ;;  %v230_v43 = vld [vmem:[%s938_s2 + $0xf0] sm:$0xff]  ;;  %v231_v44 = vld [vmem:[%s938_s2 + $0xf8] sm:$0xff]  ;;  %s704_s15 = smov [#allocation2]  }
  0x18   : > { %s489_s30 = sshll.u32 %s191_s27, 3  ;;  %v558_v45 = vpack.c.bf16 %v213_v42, %v212_v41  ;;  %v560_v46 = vpack.c.bf16 %v231_v44, %v230_v43  ;;  %v214_v47 = vld [vmem:[%s938_s2 + $0x70] sm:$0xff]  ;;  %v215_v48 = vld [vmem:[%s938_s2 + $0x78] sm:$0xff]  ;;  %v305_v54 = vld [vmem:[%s937_s1] sm:$0xf]  ;;  %s626_s18 = sshll.u32 %s704_s15, 4  ;;  %s627_s18 = int_to_ptr.vmem [resolvable:$false] %s626_s18 }
  0x19   : > { %s197_s21 = scalar_lea.vmem %s936_s0, %s489_s30  ;;  %v562_v49 = vpack.c.bf16 %v215_v48, %v214_v47  ;;  %s401_s30 = sshll.u32 %s188_s6, 4  ;;  %s891_s30 = int_to_ptr.vmem [resolvable:$true] %s401_s30 }
  0x1a   : > { %v199_v25 = vld [vmem:[%s197_s21] sm:$0xff]  ;;  %543 = vmatpush3.bf16.msra.mxu0 %v542_v19  ;;  %s622_s11 = scalar_lea.vmem %s891_s30, 64  ;;  %s628_s19 = scalar_lea.vmem %s627_s18, 128 }
  0x1b   : > { %v233_v26 = vcombine.high %v199_v25, %v199_v25  ;;  %545 = vmatprep.subr.bf16.mxu0 %v544_v20  ;;  %p623_p12 = scmp.ne.s32.totalorder %s891_s30, %s622_s11  ;;  %p629_p1 = scmp.lt.s32.totalorder %s891_s30, %s627_s18 }
  0x1c   : > { %p630_p2 = scmp.lt.s32.totalorder %s628_s19, %s622_s11 }
  0x1d   : > { %299 = vmatprep.mubr.f32.mxu0 %v233_v26  ;;  %p624_p13 = pnand %p623_p12, %p765_p4 }
  0x1e   : > { %547 = vmatpush3.bf16.msra.mxu0 %v546_v27  ;;  %p631_p3 = por %p630_p2, %p629_p1 }
  0x1f   : > { %549 = vmatprep.subr.bf16.mxu0 %v548_v28  ;;  %p625_p0 = pneg %p624_p13 }
  0x21   : > { %p632_p5 = pnand %p631_p3, %p625_p0 }
  0x22   : > { %551 = vmatpush3.bf16.msra.mxu0 %v550_v33 }
  0x23   : > { %553 = vmatprep.subr.bf16.mxu0 %v552_v34 }
  0x26   : > { %555 = vmatpush3.bf16.msra.mxu0 %v554_v39 }
  0x27   : > { %557 = vmatprep.subr.bf16.mxu0 %v556_v40 }
  0x2a   : > { %559 = vmatpush3.bf16.msra.mxu0 %v558_v45 }
  0x2b   : > { %561 = vmatprep.subr.bf16.mxu0 %v560_v46 }
  0x2e   : > { %563 = vmatpush3.bf16.msra.mxu0 %v562_v49 }
  0x31   : > { %300 = vmatmul.mubr.f32.vlgmr.msra.gmra.mrb[0].mxu0 %v199_v25 }
 0x104   : > { %v522_v51 = vpop.f32.mrb[0].mxu0 }
 0x105   : > { %v523_v52 = vpop.f32.mrb[1].mxu0 }
 0x106   : > { %v524_v53 = vadd.f32 %v523_v52, %v522_v51 }
 0x108   : > { %528 = vmatpush3.msk.msra.mxu1 %vm310_vm1, %v524_v53 }
 0x109   : > { %530 = vmatmul.mubr.msk.f32.vlgmr.msra.gmra.mrb[0].mxu1 %vm306_vm2, %v305_v54 }
 0x1dc   : > { %v380_v55 = vpop.f32.mrb[0].mxu1 }
 0x1dd   : > { %385 = vst.msk [vmem:[%s188_s6] sm:$0xf] %vm384_vm3, %v380_v55  ;;  %v531_v56 = vpop.f32.mrb[1].mxu1 }
 0x1de   : > { %635 = shalt.err (!%p632_p5)
}
 0x1df   : > { %s636_s21 = scalar_lea.hbm %s889_s9, 64  ;;  %s640_s27 = scalar_lea.hbm %s939_s3, 128 }
 0x1e0   : > { %p637_p6 = scmp.ne.s32.totalorder %s889_s9, %s636_s21  ;;  %p641_p10 = scmp.lt.u32.totalorder %s889_s9, %s939_s3 }
 0x1e1   : > { %p642_p11 = scmp.lt.u32.totalorder %s640_s27, %s636_s21  ;;  %p644_p13 = scmp.lt.u32.totalorder %s636_s21, %s889_s9 }
 0x1e2   : > { %p638_p7 = pnand %p637_p6, %p765_p4 }
 0x1e3   : > { %p643_p12 = por %p642_p11, %p641_p10 }
 0x1e4   : > { %p639_p9 = pneg %p638_p7 }
 0x1e5   : > { %p645_p0 = por %p644_p13, %p643_p12 }
 0x1e7   : > { %p646_p1 = pnand %p645_p0, %p639_p9 }
 0x1e9   : > { %649 = shalt.err (!%p646_p1)
}
 0x1ea   : > { %564 = dma.vmem_to_hbm [thread:$0]  (%p765_p4), %s891_s30, 64, %s889_s9, %s387_s10  }
 0x1eb PF: > { %p570_p2 = scmp.ge.s32.totalorder %s700_s17, 2  ;;  %s413_s4 = sand.u32 1, %s680_s12  }
 0x1ec   : > { %s414_s5 = scalar_lea.sflag [#allocation3], %s413_s4 }
 0x1ed   : > { %p567_p3 = pnand %p570_p2, %p772_p8 }
 0x1ef   : > { %675 = dma.done.wait (!%p567_p3), %s414_s5, 64  }
 0x1f0   : > { %677 = vsyncadd (!%p567_p3), %s414_s5, 4294967232  ;;  %s16_s17 = sadd.s32 1, %s700_s17   ;;  %s942_s12 = smov %s684_s13 }
 0x1f1   : > { %p13_p5 = scmp.ge.s32.totalorder %s16_s17, 4   ;;  %s943_s13 = smov %s688_s14 }
 0x1f2   : > { %s944_s14 = smov %s778_s25  ;;  %s945_s15 = smov %s696_s16 }
 0x1f3   : > { %s946_s16 = smov %s948_s20  ;;  %15 = sbr.rel (!%p13_p5) target bundleno = 4 (0x4), region = 67 }
 0x1fa   :  { %419 = vsyncpa [#allocation3], 1 }
 0x1fb   :  { %421 = vsyncpa [#allocation3 + $0x1], 1 }

</bundles_post_ra>
